<compile_context>
chip_gen: v5e
topology: v5e:2x2
jax: 0.10.0
libtpu: 0.0.40
codegen_flags: <defaults>
</compile_context>

<pallas_src>
import functools

import jax
import jax.numpy as jnp
from jax.experimental import pallas as pl
from jax.experimental.pallas import tpu as pltpu

LANES = 128
HIDDEN = 20


def _make_kernel(signs):
    """Build the MLP kernel.

    signs: length-HIDDEN tuple of Python bools (w2_j >= 0) -> folded 4-op/unit
           path; or None -> unfolded 5-op/unit fallback.
    Packed params layout (SMEM, f32[3*HIDDEN + 1]):
      folded:   [A_0..A_19, B_0..B_19, w2_0..w2_19 (unused), b2]
      unfolded: [w1_0..w1_19, b1_0..b1_19, w2_0..w2_19,      b2]
    """

    def kernel(x_ref, p_ref, o_ref):
        # x_ref: (br, 128) f32 VMEM tile; p_ref: (61,) f32 SMEM; o_ref like x.
        x = x_ref[...]
        acc = [jnp.full_like(x, p_ref[3 * HIDDEN]),   # init with b2
               jnp.zeros_like(x)]
        for j in range(HIDDEN):                        # unrolled, pure VPU
            h = x * p_ref[j] + p_ref[HIDDEN + j]
            if signs is None:
                c = jnp.maximum(h, 0.0) * p_ref[2 * HIDDEN + j]   # 5-op path
            elif signs[j]:
                c = jnp.maximum(h, 0.0)                # w2_j >= 0
            else:
                c = jnp.minimum(h, 0.0)                # w2_j < 0
            acc[j & 1] = acc[j & 1] + c
        o_ref[...] = acc[0] + acc[1]

    return kernel


@functools.partial(jax.jit, static_argnames=("signs", "block_rows"))
def _forward_impl(x, w1, b1, w2, b2, *, signs, block_rows):
    N = x.shape[0]
    w1f = jnp.ravel(w1).astype(jnp.float32)
    b1f = jnp.ravel(b1).astype(jnp.float32)
    w2f = jnp.ravel(w2).astype(jnp.float32)
    b2f = jnp.ravel(b2).astype(jnp.float32)
    if signs is not None:
        c0, c1 = w1f * w2f, b1f * w2f          # fold w2 into the hidden affine
    else:
        c0, c1 = w1f, b1f
    packed = jnp.concatenate([c0, c1, w2f, b2f])       # (3*HIDDEN + 1,)

    # Lane-dense layout: pad only up to rows8 * 128 (8-sublane tile).
    rows = max(pl.cdiv(N, LANES), 1)
    rows8 = ((rows + 7) // 8) * 8
    br = max(8, (min(int(block_rows), rows8) // 8) * 8)       # multiple of 8
    if rows8 >= 16 and pl.cdiv(rows8, br) < 2:
        br = ((rows8 // 2 + 7) // 8) * 8       # >= 2 grid steps (v7x: 2 TCs)
    grid_n = pl.cdiv(rows8, br)                # last block may be ragged

    flat = jnp.ravel(x).astype(jnp.float32)
    pad = rows8 * LANES - N
    if pad:
        flat = jnp.pad(flat, (0, pad))
    x2 = flat.reshape(rows8, LANES)

    out2 = pl.pallas_call(
        _make_kernel(signs),
        out_shape=jax.ShapeDtypeStruct((rows8, LANES), jnp.float32),
        grid_spec=pl.GridSpec(
            grid=(grid_n,),
            in_specs=[
                pl.BlockSpec((br, LANES), lambda i: (i, 0)),          # x tile
                pl.BlockSpec(memory_space=pltpu.MemorySpace.SMEM),    # params
            ],
            out_specs=pl.BlockSpec((br, LANES), lambda i: (i, 0)),
        ),
        compiler_params=pltpu.CompilerParams(
            dimension_semantics=("parallel",),
        ),
    )(x2, packed)

    # Padded tail lanes hold garbage (b2 + relu(b1)@w2); slice before use.
    return out2.reshape(-1)[:N].reshape(N, 1)


def net_forward(x, w1, b1, w2, b2, *, block_rows=2048):
    """Forward pass of Net: relu(x @ w1 + b1) @ w2 + b2.

    x: (N, 1) f32; w1: (1, 20); b1: (20,); w2: (20, 1); b2: (1,).
    """
    assert x.ndim == 2 and x.shape[1] == 1
    assert w1.size == HIDDEN and b1.size == HIDDEN and w2.size == HIDDEN
    try:
        # Static sign pattern of w2 (needs concrete weights, i.e. inference).
        signs = tuple(bool(v) for v in jax.device_get(jnp.ravel(w2) >= 0))
    except jax.errors.ConcretizationTypeError:
        signs = None                            # traced weights: 5-op fallback
    return _forward_impl(x, w1, b1, w2, b2, signs=signs,
                         block_rows=int(block_rows))


def init_params(key):
    """Torch-equivalent shapes: hidden Linear(1,20), predict Linear(20,1).
    Torch stores weight as (out, in); we keep (in, out) so the math is x @ W."""
    k1, k2, k3, k4 = jax.random.split(key, 4)
    # mimic torch default U(-1/sqrt(fan_in), 1/sqrt(fan_in))
    w1 = jax.random.uniform(k1, (1, HIDDEN), jnp.float32, -1.0, 1.0)        # fan_in=1
    b1 = jax.random.uniform(k2, (HIDDEN,), jnp.float32, -1.0, 1.0)
    bound2 = 1.0 / jnp.sqrt(float(HIDDEN))
    w2 = jax.random.uniform(k3, (HIDDEN, 1), jnp.float32, -bound2, bound2)  # fan_in=20
    b2 = jax.random.uniform(k4, (1,), jnp.float32, -bound2, bound2)
    return w1, b1, w2, b2


def reference_forward(x, w1, b1, w2, b2):
    # Elementwise f32 reference (avoids MXU default-precision effects).
    h = jnp.maximum(x * w1.reshape(1, -1) + b1.reshape(1, -1), 0.0)   # (N, 20)
    return jnp.sum(h * w2.reshape(1, -1), axis=1, keepdims=True) + b2.reshape(1, 1)


if __name__ == "__main__":
    key = jax.random.PRNGKey(0)
    pkey, _ = jax.random.split(key)
    w1, b1, w2, b2 = init_params(pkey)

    # Same data as the tutorial: torch.linspace(-1, 1, 1500).unsqueeze(1)
    N = 1500
    x = jnp.linspace(-1.0, 1.0, N, dtype=jnp.float32).reshape(N, 1)

    y = net_forward(x, w1, b1, w2, b2)
    y = jax.block_until_ready(y)

    y_ref = reference_forward(x, w1, b1, w2, b2)
    assert y.shape == (N, 1)
    assert jnp.allclose(y, y_ref, atol=1e-5, rtol=1e-5), "mismatch vs reference"

    print("KERNEL_OK")
</pallas_src>

<mosaic_0001>
module attributes {stable_mosaic.version = 11 : i64} {
  func.func @kernel(%arg0: i32, %arg1: memref<8x128xf32, #tpu.memory_space<vmem>>, %arg2: memref<61xf32, #tpu.memory_space<smem>>, %arg3: memref<8x128xf32, #tpu.memory_space<vmem>>) attributes {dimension_semantics = [#tpu.dimension_semantics<parallel>], iteration_bounds = array<i64: 2>, scalar_prefetch = 0 : i64, scratch_operands = 0 : i64, tpu.core_type = #tpu.core_type<tc>, window_params = [{transform_indices = @transform_0, window_bounds = array<i64: 8, 128>}, {transform_indices = @transform_1, window_bounds = array<i64: 61>}, {transform_indices = @transform_2, window_bounds = array<i64: 8, 128>}]} {
    %c0 = arith.constant 0 : index
    %c0_0 = arith.constant 0 : index
    %0 = vector.load %arg1[%c0, %c0_0] : memref<8x128xf32, #tpu.memory_space<vmem>>, vector<8x128xf32>
    %c60 = arith.constant 60 : index
    %1 = memref.load %arg2[%c60] : memref<61xf32, #tpu.memory_space<smem>>
    %2 = vector.broadcast %1 : f32 to vector<8x128xf32>
    %cst = arith.constant 0.000000e+00 : f32
    %3 = vector.broadcast %cst : f32 to vector<8x128xf32>
    %c0_1 = arith.constant 0 : index
    %4 = memref.load %arg2[%c0_1] : memref<61xf32, #tpu.memory_space<smem>>
    %5 = vector.broadcast %4 : f32 to vector<8x128xf32>
    %6 = arith.mulf %0, %5 : vector<8x128xf32>
    %c20 = arith.constant 20 : index
    %7 = memref.load %arg2[%c20] : memref<61xf32, #tpu.memory_space<smem>>
    %8 = vector.broadcast %7 : f32 to vector<8x128xf32>
    %9 = arith.addf %6, %8 : vector<8x128xf32>
    %cst_2 = arith.constant 0.000000e+00 : f32
    %10 = vector.broadcast %cst_2 : f32 to vector<8x128xf32>
    %11 = arith.minimumf %9, %10 : vector<8x128xf32>
    %12 = arith.addf %2, %11 : vector<8x128xf32>
    %c1 = arith.constant 1 : index
    %13 = memref.load %arg2[%c1] : memref<61xf32, #tpu.memory_space<smem>>
    %14 = vector.broadcast %13 : f32 to vector<8x128xf32>
    %15 = arith.mulf %0, %14 : vector<8x128xf32>
    %c21 = arith.constant 21 : index
    %16 = memref.load %arg2[%c21] : memref<61xf32, #tpu.memory_space<smem>>
    %17 = vector.broadcast %16 : f32 to vector<8x128xf32>
    %18 = arith.addf %15, %17 : vector<8x128xf32>
    %cst_3 = arith.constant 0.000000e+00 : f32
    %19 = vector.broadcast %cst_3 : f32 to vector<8x128xf32>
    %20 = arith.maximumf %18, %19 : vector<8x128xf32>
    %21 = arith.addf %3, %20 : vector<8x128xf32>
    %c2 = arith.constant 2 : index
    %22 = memref.load %arg2[%c2] : memref<61xf32, #tpu.memory_space<smem>>
    %23 = vector.broadcast %22 : f32 to vector<8x128xf32>
    %24 = arith.mulf %0, %23 : vector<8x128xf32>
    %c22 = arith.constant 22 : index
    %25 = memref.load %arg2[%c22] : memref<61xf32, #tpu.memory_space<smem>>
    %26 = vector.broadcast %25 : f32 to vector<8x128xf32>
    %27 = arith.addf %24, %26 : vector<8x128xf32>
    %cst_4 = arith.constant 0.000000e+00 : f32
    %28 = vector.broadcast %cst_4 : f32 to vector<8x128xf32>
    %29 = arith.minimumf %27, %28 : vector<8x128xf32>
    %30 = arith.addf %12, %29 : vector<8x128xf32>
    %c3 = arith.constant 3 : index
    %31 = memref.load %arg2[%c3] : memref<61xf32, #tpu.memory_space<smem>>
    %32 = vector.broadcast %31 : f32 to vector<8x128xf32>
    %33 = arith.mulf %0, %32 : vector<8x128xf32>
    %c23 = arith.constant 23 : index
    %34 = memref.load %arg2[%c23] : memref<61xf32, #tpu.memory_space<smem>>
    %35 = vector.broadcast %34 : f32 to vector<8x128xf32>
    %36 = arith.addf %33, %35 : vector<8x128xf32>
    %cst_5 = arith.constant 0.000000e+00 : f32
    %37 = vector.broadcast %cst_5 : f32 to vector<8x128xf32>
    %38 = arith.minimumf %36, %37 : vector<8x128xf32>
    %39 = arith.addf %21, %38 : vector<8x128xf32>
    %c4 = arith.constant 4 : index
    %40 = memref.load %arg2[%c4] : memref<61xf32, #tpu.memory_space<smem>>
    %41 = vector.broadcast %40 : f32 to vector<8x128xf32>
    %42 = arith.mulf %0, %41 : vector<8x128xf32>
    %c24 = arith.constant 24 : index
    %43 = memref.load %arg2[%c24] : memref<61xf32, #tpu.memory_space<smem>>
    %44 = vector.broadcast %43 : f32 to vector<8x128xf32>
    %45 = arith.addf %42, %44 : vector<8x128xf32>
    %cst_6 = arith.constant 0.000000e+00 : f32
    %46 = vector.broadcast %cst_6 : f32 to vector<8x128xf32>
    %47 = arith.maximumf %45, %46 : vector<8x128xf32>
    %48 = arith.addf %30, %47 : vector<8x128xf32>
    %c5 = arith.constant 5 : index
    %49 = memref.load %arg2[%c5] : memref<61xf32, #tpu.memory_space<smem>>
    %50 = vector.broadcast %49 : f32 to vector<8x128xf32>
    %51 = arith.mulf %0, %50 : vector<8x128xf32>
    %c25 = arith.constant 25 : index
    %52 = memref.load %arg2[%c25] : memref<61xf32, #tpu.memory_space<smem>>
    %53 = vector.broadcast %52 : f32 to vector<8x128xf32>
    %54 = arith.addf %51, %53 : vector<8x128xf32>
    %cst_7 = arith.constant 0.000000e+00 : f32
    %55 = vector.broadcast %cst_7 : f32 to vector<8x128xf32>
    %56 = arith.maximumf %54, %55 : vector<8x128xf32>
    %57 = arith.addf %39, %56 : vector<8x128xf32>
    %c6 = arith.constant 6 : index
    %58 = memref.load %arg2[%c6] : memref<61xf32, #tpu.memory_space<smem>>
    %59 = vector.broadcast %58 : f32 to vector<8x128xf32>
    %60 = arith.mulf %0, %59 : vector<8x128xf32>
    %c26 = arith.constant 26 : index
    %61 = memref.load %arg2[%c26] : memref<61xf32, #tpu.memory_space<smem>>
    %62 = vector.broadcast %61 : f32 to vector<8x128xf32>
    %63 = arith.addf %60, %62 : vector<8x128xf32>
    %cst_8 = arith.constant 0.000000e+00 : f32
    %64 = vector.broadcast %cst_8 : f32 to vector<8x128xf32>
    %65 = arith.maximumf %63, %64 : vector<8x128xf32>
    %66 = arith.addf %48, %65 : vector<8x128xf32>
    %c7 = arith.constant 7 : index
    %67 = memref.load %arg2[%c7] : memref<61xf32, #tpu.memory_space<smem>>
    %68 = vector.broadcast %67 : f32 to vector<8x128xf32>
    %69 = arith.mulf %0, %68 : vector<8x128xf32>
    %c27 = arith.constant 27 : index
    %70 = memref.load %arg2[%c27] : memref<61xf32, #tpu.memory_space<smem>>
    %71 = vector.broadcast %70 : f32 to vector<8x128xf32>
    %72 = arith.addf %69, %71 : vector<8x128xf32>
    %cst_9 = arith.constant 0.000000e+00 : f32
    %73 = vector.broadcast %cst_9 : f32 to vector<8x128xf32>
    %74 = arith.maximumf %72, %73 : vector<8x128xf32>
    %75 = arith.addf %57, %74 : vector<8x128xf32>
    %c8 = arith.constant 8 : index
    %76 = memref.load %arg2[%c8] : memref<61xf32, #tpu.memory_space<smem>>
    %77 = vector.broadcast %76 : f32 to vector<8x128xf32>
    %78 = arith.mulf %0, %77 : vector<8x128xf32>
    %c28 = arith.constant 28 : index
    %79 = memref.load %arg2[%c28] : memref<61xf32, #tpu.memory_space<smem>>
    %80 = vector.broadcast %79 : f32 to vector<8x128xf32>
    %81 = arith.addf %78, %80 : vector<8x128xf32>
    %cst_10 = arith.constant 0.000000e+00 : f32
    %82 = vector.broadcast %cst_10 : f32 to vector<8x128xf32>
    %83 = arith.minimumf %81, %82 : vector<8x128xf32>
    %84 = arith.addf %66, %83 : vector<8x128xf32>
    %c9 = arith.constant 9 : index
    %85 = memref.load %arg2[%c9] : memref<61xf32, #tpu.memory_space<smem>>
    %86 = vector.broadcast %85 : f32 to vector<8x128xf32>
    %87 = arith.mulf %0, %86 : vector<8x128xf32>
    %c29 = arith.constant 29 : index
    %88 = memref.load %arg2[%c29] : memref<61xf32, #tpu.memory_space<smem>>
    %89 = vector.broadcast %88 : f32 to vector<8x128xf32>
    %90 = arith.addf %87, %89 : vector<8x128xf32>
    %cst_11 = arith.constant 0.000000e+00 : f32
    %91 = vector.broadcast %cst_11 : f32 to vector<8x128xf32>
    %92 = arith.maximumf %90, %91 : vector<8x128xf32>
    %93 = arith.addf %75, %92 : vector<8x128xf32>
    %c10 = arith.constant 10 : index
    %94 = memref.load %arg2[%c10] : memref<61xf32, #tpu.memory_space<smem>>
    %95 = vector.broadcast %94 : f32 to vector<8x128xf32>
    %96 = arith.mulf %0, %95 : vector<8x128xf32>
    %c30 = arith.constant 30 : index
    %97 = memref.load %arg2[%c30] : memref<61xf32, #tpu.memory_space<smem>>
    %98 = vector.broadcast %97 : f32 to vector<8x128xf32>
    %99 = arith.addf %96, %98 : vector<8x128xf32>
    %cst_12 = arith.constant 0.000000e+00 : f32
    %100 = vector.broadcast %cst_12 : f32 to vector<8x128xf32>
    %101 = arith.minimumf %99, %100 : vector<8x128xf32>
    %102 = arith.addf %84, %101 : vector<8x128xf32>
    %c11 = arith.constant 11 : index
    %103 = memref.load %arg2[%c11] : memref<61xf32, #tpu.memory_space<smem>>
    %104 = vector.broadcast %103 : f32 to vector<8x128xf32>
    %105 = arith.mulf %0, %104 : vector<8x128xf32>
    %c31 = arith.constant 31 : index
    %106 = memref.load %arg2[%c31] : memref<61xf32, #tpu.memory_space<smem>>
    %107 = vector.broadcast %106 : f32 to vector<8x128xf32>
    %108 = arith.addf %105, %107 : vector<8x128xf32>
    %cst_13 = arith.constant 0.000000e+00 : f32
    %109 = vector.broadcast %cst_13 : f32 to vector<8x128xf32>
    %110 = arith.maximumf %108, %109 : vector<8x128xf32>
    %111 = arith.addf %93, %110 : vector<8x128xf32>
    %c12 = arith.constant 12 : index
    %112 = memref.load %arg2[%c12] : memref<61xf32, #tpu.memory_space<smem>>
    %113 = vector.broadcast %112 : f32 to vector<8x128xf32>
    %114 = arith.mulf %0, %113 : vector<8x128xf32>
    %c32 = arith.constant 32 : index
    %115 = memref.load %arg2[%c32] : memref<61xf32, #tpu.memory_space<smem>>
    %116 = vector.broadcast %115 : f32 to vector<8x128xf32>
    %117 = arith.addf %114, %116 : vector<8x128xf32>
    %cst_14 = arith.constant 0.000000e+00 : f32
    %118 = vector.broadcast %cst_14 : f32 to vector<8x128xf32>
    %119 = arith.maximumf %117, %118 : vector<8x128xf32>
    %120 = arith.addf %102, %119 : vector<8x128xf32>
    %c13 = arith.constant 13 : index
    %121 = memref.load %arg2[%c13] : memref<61xf32, #tpu.memory_space<smem>>
    %122 = vector.broadcast %121 : f32 to vector<8x128xf32>
    %123 = arith.mulf %0, %122 : vector<8x128xf32>
    %c33 = arith.constant 33 : index
    %124 = memref.load %arg2[%c33] : memref<61xf32, #tpu.memory_space<smem>>
    %125 = vector.broadcast %124 : f32 to vector<8x128xf32>
    %126 = arith.addf %123, %125 : vector<8x128xf32>
    %cst_15 = arith.constant 0.000000e+00 : f32
    %127 = vector.broadcast %cst_15 : f32 to vector<8x128xf32>
    %128 = arith.maximumf %126, %127 : vector<8x128xf32>
    %129 = arith.addf %111, %128 : vector<8x128xf32>
    %c14 = arith.constant 14 : index
    %130 = memref.load %arg2[%c14] : memref<61xf32, #tpu.memory_space<smem>>
    %131 = vector.broadcast %130 : f32 to vector<8x128xf32>
    %132 = arith.mulf %0, %131 : vector<8x128xf32>
    %c34 = arith.constant 34 : index
    %133 = memref.load %arg2[%c34] : memref<61xf32, #tpu.memory_space<smem>>
    %134 = vector.broadcast %133 : f32 to vector<8x128xf32>
    %135 = arith.addf %132, %134 : vector<8x128xf32>
    %cst_16 = arith.constant 0.000000e+00 : f32
    %136 = vector.broadcast %cst_16 : f32 to vector<8x128xf32>
    %137 = arith.minimumf %135, %136 : vector<8x128xf32>
    %138 = arith.addf %120, %137 : vector<8x128xf32>
    %c15 = arith.constant 15 : index
    %139 = memref.load %arg2[%c15] : memref<61xf32, #tpu.memory_space<smem>>
    %140 = vector.broadcast %139 : f32 to vector<8x128xf32>
    %141 = arith.mulf %0, %140 : vector<8x128xf32>
    %c35 = arith.constant 35 : index
    %142 = memref.load %arg2[%c35] : memref<61xf32, #tpu.memory_space<smem>>
    %143 = vector.broadcast %142 : f32 to vector<8x128xf32>
    %144 = arith.addf %141, %143 : vector<8x128xf32>
    %cst_17 = arith.constant 0.000000e+00 : f32
    %145 = vector.broadcast %cst_17 : f32 to vector<8x128xf32>
    %146 = arith.maximumf %144, %145 : vector<8x128xf32>
    %147 = arith.addf %129, %146 : vector<8x128xf32>
    %c16 = arith.constant 16 : index
    %148 = memref.load %arg2[%c16] : memref<61xf32, #tpu.memory_space<smem>>
    %149 = vector.broadcast %148 : f32 to vector<8x128xf32>
    %150 = arith.mulf %0, %149 : vector<8x128xf32>
    %c36 = arith.constant 36 : index
    %151 = memref.load %arg2[%c36] : memref<61xf32, #tpu.memory_space<smem>>
    %152 = vector.broadcast %151 : f32 to vector<8x128xf32>
    %153 = arith.addf %150, %152 : vector<8x128xf32>
    %cst_18 = arith.constant 0.000000e+00 : f32
    %154 = vector.broadcast %cst_18 : f32 to vector<8x128xf32>
    %155 = arith.minimumf %153, %154 : vector<8x128xf32>
    %156 = arith.addf %138, %155 : vector<8x128xf32>
    %c17 = arith.constant 17 : index
    %157 = memref.load %arg2[%c17] : memref<61xf32, #tpu.memory_space<smem>>
    %158 = vector.broadcast %157 : f32 to vector<8x128xf32>
    %159 = arith.mulf %0, %158 : vector<8x128xf32>
    %c37 = arith.constant 37 : index
    %160 = memref.load %arg2[%c37] : memref<61xf32, #tpu.memory_space<smem>>
    %161 = vector.broadcast %160 : f32 to vector<8x128xf32>
    %162 = arith.addf %159, %161 : vector<8x128xf32>
    %cst_19 = arith.constant 0.000000e+00 : f32
    %163 = vector.broadcast %cst_19 : f32 to vector<8x128xf32>
    %164 = arith.maximumf %162, %163 : vector<8x128xf32>
    %165 = arith.addf %147, %164 : vector<8x128xf32>
    %c18 = arith.constant 18 : index
    %166 = memref.load %arg2[%c18] : memref<61xf32, #tpu.memory_space<smem>>
    %167 = vector.broadcast %166 : f32 to vector<8x128xf32>
    %168 = arith.mulf %0, %167 : vector<8x128xf32>
    %c38 = arith.constant 38 : index
    %169 = memref.load %arg2[%c38] : memref<61xf32, #tpu.memory_space<smem>>
    %170 = vector.broadcast %169 : f32 to vector<8x128xf32>
    %171 = arith.addf %168, %170 : vector<8x128xf32>
    %cst_20 = arith.constant 0.000000e+00 : f32
    %172 = vector.broadcast %cst_20 : f32 to vector<8x128xf32>
    %173 = arith.minimumf %171, %172 : vector<8x128xf32>
    %174 = arith.addf %156, %173 : vector<8x128xf32>
    %c19 = arith.constant 19 : index
    %175 = memref.load %arg2[%c19] : memref<61xf32, #tpu.memory_space<smem>>
    %176 = vector.broadcast %175 : f32 to vector<8x128xf32>
    %177 = arith.mulf %0, %176 : vector<8x128xf32>
    %c39 = arith.constant 39 : index
    %178 = memref.load %arg2[%c39] : memref<61xf32, #tpu.memory_space<smem>>
    %179 = vector.broadcast %178 : f32 to vector<8x128xf32>
    %180 = arith.addf %177, %179 : vector<8x128xf32>
    %cst_21 = arith.constant 0.000000e+00 : f32
    %181 = vector.broadcast %cst_21 : f32 to vector<8x128xf32>
    %182 = arith.minimumf %180, %181 : vector<8x128xf32>
    %183 = arith.addf %165, %182 : vector<8x128xf32>
    %184 = arith.addf %174, %183 : vector<8x128xf32>
    %c0_22 = arith.constant 0 : index
    %c0_23 = arith.constant 0 : index
    %185 = vector.load %arg3[%c0_22, %c0_23] : memref<8x128xf32, #tpu.memory_space<vmem>>, vector<8x128xf32>
    tpu.vector_store %arg3[%c0_22, %c0_23], %184 {strides = array<i32>} : memref<8x128xf32, #tpu.memory_space<vmem>>, vector<8x128xf32>,
    return
  }
  func.func @transform_0(%arg0: i32) -> (i32, i32) {
    %c0_i32 = arith.constant 0 : i32
    %c0_i32_0 = arith.constant 0 : i32
    return %arg0, %c0_i32 : i32, i32
  }
  func.func @transform_1(%arg0: i32) -> i32 {
    %c0_i32 = arith.constant 0 : i32
    %c0_i32_0 = arith.constant 0 : i32
    return %c0_i32 : i32
  }
  func.func @transform_2(%arg0: i32) -> (i32, i32) {
    %c0_i32 = arith.constant 0 : i32
    %c0_i32_0 = arith.constant 0 : i32
    return %arg0, %c0_i32 : i32, i32
  }
}

</mosaic_0001>

<bundles_post_ra>
// kernel: _forward_impl.1
= control target key start
LH: loop header
LB: loop body
LE: loop exit
PB: predicated region body
PF: predicated region fallthrough
CT: control target
= control target key end

     0   :  { %7 = vsyncpa [#allocation3], 0  ;;  %s496_s9 = smov 0   ;;  %s545_s0 = inlined_call_operand.vmem [shape: f32[16,128], index: 0, kind: input, shape index: {}]   ;;  %s546_s1 = inlined_call_operand.vmem [shape: f32[61], index: 1, kind: input, shape index: {}]   ;;  %s547_s2 = inlined_call_operand.vmem [shape: f32[16,128], index: 2, kind: output, shape index: {}]  }
   0x1 LB: > { %s383_s10 = sadd.s32 4294967295, %s478_s9   ;;  %p385_p0 = scmp.ge.s32.totalorder %s478_s9, 1  ;;  %s478_s9 = sphi %s496_s9, %s13_s9  }
   0x2   : > { %p91_p1 = scmp.lt.s32.totalorder %s478_s9, 3  ;;  %s103_s13 = sshll.u32 %s546_s1, 4  ;;  %s104_s13 = int_to_ptr.vmem [resolvable:$true] %s103_s13 }
   0x3   : > { %p442_p3 = scmp.eq.s32.totalorder %s383_s10, 0  ;;  %s480_s14 = smov [#allocation2]  }
   0x4   : > { %p92_p2 = pnand %p385_p0, %p91_p1 }
   0x6   : > { %p438_p4 = pneg %p92_p2  ;;  %123 = sbr.rel (%p92_p2) target bundleno = 71 (0x47), region = 28 }
   0x8   : > { %p439_p5 = pnand %p442_p3, %p438_p4 }
   0xa   : > { %441 = dma.vmem_to_smem (!%p439_p5), %s104_s13, 16, %s480_s14, [#allocation3]  }
   0xb   : > { %473 = dma.done.wait (%p442_p3), [#allocation3], 16  }
   0xc   : > { %475 = vsyncadd (%p442_p3), [#allocation3], 4294967280 }
   0xd   : > { %130 = sfence }
   0xe   : > { %p145_p6 = scmp.lt.s32.totalorder %s383_s10, 1  ;;  %s156_s15 = sld [smem:[#allocation2]] }
   0xf   : > { %s393_s16 = sld [smem:[#allocation2 + $0x14]] }
  0x10   : > { %s549_s10 = smov (!%p145_p6, %s383_s10), 1  ;;  %s394_s18 = sld [smem:[#allocation2 + $0x1]] }
  0x11   : > { %s390_s17 = sshll.u32 %s549_s10, 3  ;;  %s392_s22 = sld [smem:[#allocation2 + $0x3c]] }
  0x12   : > { %s148_s21 = scalar_lea.vmem %s545_s0, %s390_s17  ;;  %s395_s23 = sld [smem:[#allocation2 + $0x15]] }
  0x13   : > { %v515_v0 = vld [vmem:[%s148_s21] sm:$0xff]  ;;  %s396_s24 = sld [smem:[#allocation2 + $0x2]] }
  0x14   : > { %v157_v1 = vstv %s156_s15  ;;  %s397_s25 = sld [smem:[#allocation2 + $0x16]] }
  0x15   : > { %v158_v2 = vmul.f32 %v157_v1, %v515_v0  ;;  %v160_v3 = vstv %s393_s16  ;;  %s398_s26 = sld [smem:[#allocation2 + $0x3]] }
  0x16   : > { %v165_v5 = vstv %s394_s18  ;;  %s399_s27 = sld [smem:[#allocation2 + $0x17]] }
  0x17   : > { %v161_v4 = vadd.f32 %v160_v3, %v158_v2  ;;  %v166_v6 = vmul.f32 %v165_v5, %v515_v0  ;;  %s400_s28 = sld [smem:[#allocation2 + $0x4]]  ;;  %v155_v9 = vstv %s392_s22 }
  0x18   : > { %v168_v8 = vstv %s395_s23  ;;  %s401_s29 = sld [smem:[#allocation2 + $0x18]] }
  0x19   : > { %v162_v7 = vmin.f32 %v161_v4, 0.0  ;;  %v169_v10 = vadd.f32 %v168_v8, %v166_v6  ;;  %v173_v11 = vstv %s396_s24  ;;  %s402_s30 = sld [smem:[#allocation2 + $0x5]] }
  0x1a   : > { %v174_v12 = vmul.f32 %v173_v11, %v515_v0  ;;  %v176_v13 = vstv %s397_s25  ;;  %s403_s3 = sld [smem:[#allocation2 + $0x19]] }
  0x1b   : > { %v181_v14 = vstv %s398_s26  ;;  %s404_s4 = sld [smem:[#allocation2 + $0x6]]  ;;  %v163_v15 = vadd.f32 %v162_v7, %v155_v9  ;;  %v170_v19 = vmax.f32 %v169_v10, 0.0 }
  0x1c   : > { %v177_v16 = vadd.f32 %v176_v13, %v174_v12  ;;  %v182_v17 = vmul.f32 %v181_v14, %v515_v0  ;;  %v184_v18 = vstv %s399_s27  ;;  %s405_s5 = sld [smem:[#allocation2 + $0x1a]] }
  0x1d   : > { %v189_v20 = vstv %s400_s28  ;;  %s406_s6 = sld [smem:[#allocation2 + $0x7]] }
  0x1e   : > { %v178_v21 = vmin.f32 %v177_v16, 0.0  ;;  %v185_v22 = vadd.f32 %v184_v18, %v182_v17  ;;  %v190_v23 = vmul.f32 %v189_v20, %v515_v0  ;;  %v192_v24 = vstv %s401_s29  ;;  %s407_s7 = sld [smem:[#allocation2 + $0x1b]] }
  0x1f   : > { %v197_v25 = vstv %s402_s30  ;;  %s408_s8 = sld [smem:[#allocation2 + $0x8]] }
  0x20   : > { %v179_v26 = vadd.f32 %v178_v21, %v163_v15  ;;  %v186_v27 = vmin.f32 %v185_v22, 0.0  ;;  %v193_v28 = vadd.f32 %v192_v24, %v190_v23  ;;  %v198_v29 = vmul.f32 %v197_v25, %v515_v0  ;;  %s409_s11 = sld [smem:[#allocation2 + $0x1c]] }
  0x21   : > { %v200_v30 = vstv %s403_s3  ;;  %v205_v31 = vstv %s404_s4  ;;  %s410_s12 = sld [smem:[#allocation2 + $0x9]] }
  0x22   : > { %v187_v32 = vadd.f32 %v186_v27, %v170_v19  ;;  %v194_v33 = vmax.f32 %v193_v28, 0.0  ;;  %v201_v34 = vadd.f32 %v200_v30, %v198_v29  ;;  %v206_v35 = vmul.f32 %v205_v31, %v515_v0  ;;  %s411_s13 = sld [smem:[#allocation2 + $0x1d]] }
  0x23   : > { %v208_v36 = vstv %s405_s5  ;;  %v213_v37 = vstv %s406_s6  ;;  %s412_s14 = sld [smem:[#allocation2 + $0xa]] }
  0x24   : > { %v195_v38 = vadd.f32 %v194_v33, %v179_v26  ;;  %v202_v39 = vmax.f32 %v201_v34, 0.0  ;;  %v209_v40 = vadd.f32 %v208_v36, %v206_v35  ;;  %v214_v41 = vmul.f32 %v213_v37, %v515_v0  ;;  %s413_s15 = sld [smem:[#allocation2 + $0x1e]] }
  0x25   : > { %v216_v42 = vstv %s407_s7  ;;  %v221_v43 = vstv %s408_s8  ;;  %s414_s16 = sld [smem:[#allocation2 + $0xb]] }
  0x26   : > { %v203_v44 = vadd.f32 %v202_v39, %v187_v32  ;;  %v210_v45 = vmax.f32 %v209_v40, 0.0  ;;  %v217_v46 = vadd.f32 %v216_v42, %v214_v41  ;;  %v222_v47 = vmul.f32 %v221_v43, %v515_v0  ;;  %s415_s18 = sld [smem:[#allocation2 + $0x1f]] }
  0x27   : > { %v224_v48 = vstv %s409_s11  ;;  %v229_v49 = vstv %s410_s12  ;;  %s416_s19 = sld [smem:[#allocation2 + $0xc]]  ;;  %s152_s11 = scalar_lea.vmem %s547_s2, %s390_s17 }
  0x28   : > { %v211_v50 = vadd.f32 %v210_v45, %v195_v38  ;;  %v218_v51 = vmax.f32 %v217_v46, 0.0  ;;  %v225_v52 = vadd.f32 %v224_v48, %v222_v47  ;;  %v230_v53 = vmul.f32 %v229_v49, %v515_v0  ;;  %s417_s20 = sld [smem:[#allocation2 + $0x20]] }
  0x29   : > { %v232_v54 = vstv %s411_s13  ;;  %v237_v55 = vstv %s412_s14  ;;  %s418_s21 = sld [smem:[#allocation2 + $0xd]] }
  0x2a   : > { %v219_v56 = vadd.f32 %v218_v51, %v203_v44  ;;  %v226_v57 = vmin.f32 %v225_v52, 0.0  ;;  %v233_v58 = vadd.f32 %v232_v54, %v230_v53  ;;  %v238_v59 = vmul.f32 %v237_v55, %v515_v0  ;;  %s419_s22 = sld [smem:[#allocation2 + $0x21]] }
  0x2b   : > { %v240_v60 = vstv %s413_s15  ;;  %v245_v61 = vstv %s414_s16  ;;  %s420_s23 = sld [smem:[#allocation2 + $0xe]] }
  0x2c   : > { %v227_v62 = vadd.f32 %v226_v57, %v211_v50  ;;  %v234_v63 = vmax.f32 %v233_v58, 0.0  ;;  %v241_v1 = vadd.f32 %v240_v60, %v238_v59  ;;  %v246_v2 = vmul.f32 %v245_v61, %v515_v0  ;;  %s421_s24 = sld [smem:[#allocation2 + $0x22]] }
  0x2d   : > { %v248_v3 = vstv %s415_s18  ;;  %v253_v4 = vstv %s416_s19  ;;  %s422_s25 = sld [smem:[#allocation2 + $0xf]] }
  0x2e   : > { %v235_v5 = vadd.f32 %v234_v63, %v219_v56  ;;  %v242_v6 = vmin.f32 %v241_v1, 0.0  ;;  %v249_v7 = vadd.f32 %v248_v3, %v246_v2  ;;  %v254_v8 = vmul.f32 %v253_v4, %v515_v0  ;;  %s423_s26 = sld [smem:[#allocation2 + $0x23]] }
  0x2f   : > { %v256_v9 = vstv %s417_s20  ;;  %v261_v10 = vstv %s418_s21  ;;  %s424_s27 = sld [smem:[#allocation2 + $0x10]] }
  0x30   : > { %v243_v11 = vadd.f32 %v242_v6, %v227_v62  ;;  %v250_v12 = vmax.f32 %v249_v7, 0.0  ;;  %v257_v13 = vadd.f32 %v256_v9, %v254_v8  ;;  %v262_v14 = vmul.f32 %v261_v10, %v515_v0  ;;  %s425_s28 = sld [smem:[#allocation2 + $0x24]] }
  0x31   : > { %v264_v15 = vstv %s419_s22  ;;  %v269_v16 = vstv %s420_s23  ;;  %s426_s29 = sld [smem:[#allocation2 + $0x11]] }
  0x32   : > { %v251_v17 = vadd.f32 %v250_v12, %v235_v5  ;;  %v258_v18 = vmax.f32 %v257_v13, 0.0  ;;  %v265_v19 = vadd.f32 %v264_v15, %v262_v14  ;;  %v270_v20 = vmul.f32 %v269_v16, %v515_v0  ;;  %s427_s30 = sld [smem:[#allocation2 + $0x25]] }
  0x33   : > { %v272_v21 = vstv %s421_s24  ;;  %v277_v22 = vstv %s422_s25  ;;  %s428_s3 = sld [smem:[#allocation2 + $0x12]] }
  0x34   : > { %v259_v23 = vadd.f32 %v258_v18, %v243_v11  ;;  %v266_v24 = vmax.f32 %v265_v19, 0.0  ;;  %v273_v25 = vadd.f32 %v272_v21, %v270_v20  ;;  %v278_v26 = vmul.f32 %v277_v22, %v515_v0  ;;  %s429_s4 = sld [smem:[#allocation2 + $0x26]] }
  0x35   : > { %v280_v27 = vstv %s423_s26  ;;  %v285_v28 = vstv %s424_s27  ;;  %s430_s5 = sld [smem:[#allocation2 + $0x13]] }
  0x36   : > { %v267_v29 = vadd.f32 %v266_v24, %v251_v17  ;;  %v274_v30 = vmin.f32 %v273_v25, 0.0  ;;  %v281_v31 = vadd.f32 %v280_v27, %v278_v26  ;;  %v286_v32 = vmul.f32 %v285_v28, %v515_v0  ;;  %s431_s6 = sld [smem:[#allocation2 + $0x27]] }
  0x37   : > { %v288_v33 = vstv %s425_s28  ;;  %v293_v34 = vstv %s426_s29 }
  0x38   : > { %v275_v35 = vadd.f32 %v274_v30, %v259_v23  ;;  %v282_v36 = vmax.f32 %v281_v31, 0.0  ;;  %v289_v37 = vadd.f32 %v288_v33, %v286_v32  ;;  %v294_v38 = vmul.f32 %v293_v34, %v515_v0 }
  0x39   : > { %v296_v39 = vstv %s427_s30  ;;  %v301_v40 = vstv %s428_s3 }
  0x3a   : > { %v283_v41 = vadd.f32 %v282_v36, %v267_v29  ;;  %v290_v42 = vmin.f32 %v289_v37, 0.0  ;;  %v297_v43 = vadd.f32 %v296_v39, %v294_v38  ;;  %v302_v44 = vmul.f32 %v301_v40, %v515_v0 }
  0x3b   : > { %v304_v45 = vstv %s429_s4  ;;  %v309_v46 = vstv %s430_s5 }
  0x3c   : > { %v291_v47 = vadd.f32 %v290_v42, %v275_v35  ;;  %v298_v48 = vmax.f32 %v297_v43, 0.0  ;;  %v305_v49 = vadd.f32 %v304_v45, %v302_v44  ;;  %v310_v50 = vmul.f32 %v309_v46, %v515_v0 }
  0x3d   : > { %v312_v51 = vstv %s431_s6 }
  0x3e   : > { %v299_v52 = vadd.f32 %v298_v48, %v283_v41  ;;  %v306_v53 = vmin.f32 %v305_v49, 0.0  ;;  %v313_v54 = vadd.f32 %v312_v51, %v310_v50 }
  0x40   : > { %v307_v55 = vadd.f32 %v306_v53, %v291_v47  ;;  %v314_v56 = vmin.f32 %v313_v54, 0.0 }
  0x42   : > { %v315_v57 = vadd.f32 %v314_v56, %v299_v52 }
  0x44   : > { %v316_v58 = vadd.f32 %v315_v57, %v307_v55 }
  0x46   : > { %317 = vst [vmem:[%s152_s11] sm:$0xff] %v316_v58 }
  0x47 PF: > { %s13_s9 = sadd.s32 1, %s478_s9  }
  0x48   : > { %p10_p7 = scmp.ge.s32.totalorder %s13_s9, 4  }
  0x4a   :  { %12 = sbr.rel (!%p10_p7) target bundleno = 1 (0x1), region = 63 }
  0x4f   :  { %337 = vsyncpa [#allocation3], 1 }
  0x50   :  { %339 = vsyncpa [#allocation3 + $0x1], 1 }

</bundles_post_ra>
